<compile_context>
chip_gen: v7x
topology: tpu7x:2x2x1
jax: 0.10.0
libtpu: 0.0.40
codegen_flags: <defaults>
</compile_context>

<pallas_src>
import functools
import math

import numpy as np

import jax
import jax.numpy as jnp
from jax import lax
from jax.experimental import pallas as pl
from jax.experimental.pallas import tpu as pltpu


def _additive_attn_kernel(q_ref, v_ref, w1_ref, w2_ref, b_ref, vw_ref,
                          out_ref, *acc_scratch, s_total, ts_size, ragged_s):
    # grid = (batch tiles, seq tiles); seq is the reduction axis.
    s_idx = pl.program_id(1)
    acc_ref = acc_scratch[0] if acc_scratch else out_ref   # out_ref is f32-resident

    @pl.when(s_idx == 0)
    def _():
        acc_ref[...] = jnp.zeros_like(acc_ref)

    TB, TS, D = q_ref.shape
    vals = v_ref[...]                               # (TB, TS, D) (compute dtype)
    q2 = q_ref[...].reshape(TB * TS, D)             # fold batch rows into one MXU pass
    v2 = vals.reshape(TB * TS, D)

    # x @ W^T as a trans_b contraction: contract last dims directly, no weight transpose.
    dn = (((1,), (1,)), ((), ()))
    t1 = lax.dot_general(q2, w1_ref[...], dn, preferred_element_type=jnp.float32)
    t1 = t1 + lax.dot_general(v2, w2_ref[...], dn, preferred_element_type=jnp.float32)

    energy = jnp.tanh(t1 + b_ref[...].astype(jnp.float32))       # (TB*TS, D), EUP tanh

    # alpha[b, s] = <energy[b, s, :], v_weight>   (VPU mul + lane reduce)
    alpha = jnp.sum(energy * vw_ref[...].astype(jnp.float32), axis=-1, keepdims=True)
    alpha = alpha.reshape(TB, TS, 1)

    if ragged_s:
        # Mask rows past the true sequence length in the (only possibly ragged)
        # final S tile; alpha for those rows must not contribute to the reduction.
        pos = lax.broadcasted_iota(jnp.int32, (TS, 1), 0).reshape(1, TS, 1)
        alpha = jnp.where(pos + s_idx * ts_size < s_total, alpha, 0.0)

    # Partial output for this S tile: sum_s alpha[b, s] * values[b, s, :]
    acc_ref[...] += jnp.sum(alpha * vals.astype(jnp.float32), axis=1, keepdims=True)

    if acc_scratch:
        @pl.when(s_idx == pl.num_programs(1) - 1)
        def _():
            out_ref[...] = acc_ref[...].astype(out_ref.dtype)


def additive_attention(query, values, w1, w2, bias, v_weight, *,
                       compute_dtype=jnp.bfloat16,
                       target_block_bytes=2 * 1024 * 1024):
    """query, values: (B, S, D); w1, w2: (D, D); bias: (1,1,D); v_weight: (1, D).
    Returns output of shape (B, 1, D) in the original query dtype."""
    B, S, D = query.shape
    assert values.shape == (B, S, D)
    assert w1.shape == (D, D) and w2.shape == (D, D)

    out_dtype = query.dtype
    if compute_dtype is None:
        compute_dtype = query.dtype

    # Cast streamed tensors and MXU weights (halves HBM bytes / MXU passes for bf16).
    query = query.astype(compute_dtype)
    values = values.astype(compute_dtype)
    w1 = w1.astype(compute_dtype)
    w2 = w2.astype(compute_dtype)
    bias2 = bias.reshape(1, D).astype(jnp.float32)
    vw2 = v_weight.reshape(1, D).astype(jnp.float32)

    itemsize = np.dtype(compute_dtype).itemsize
    out_itemsize = np.dtype(out_dtype).itemsize

    # ---- Tile selection: target ~target_block_bytes of q (and v) per grid step.
    target_rows = max(256, min(4096, target_block_bytes // max(1, D * itemsize)))
    if S <= target_rows:
        TS = S                                   # full-S block, no ragged tile
    else:
        TS = max(8, (target_rows // 8) * 8)      # sublane-aligned S tile
    ragged_s = (S % TS) != 0
    ns = -(-S // TS)

    TB = max(1, min(B, target_rows // TS))
    if B > 1:
        # v7x has 2 TensorCores: keep >= 2 blocks on the "parallel" B axis.
        TB = min(TB, -(-B // 2))
    nb = -(-B // TB)
    grid = (nb, ns)

    # ---- VMEM budgeting. Weights have a constant index_map; single-buffer them
    # when they are large enough to matter (saves half the weight footprint on
    # v7x's 64 MiB / v5e's 16 MiB-default scoped VMEM).
    weight_bytes = D * D * itemsize
    single_buffer_weights = (2 * weight_bytes) >= (4 * 1024 * 1024)
    w_buffers = 1 if single_buffer_weights else 2
    use_out_as_acc = (out_dtype == jnp.float32)

    vmem_need = (
        2 * 2 * TB * TS * D * itemsize          # q, v blocks, double-buffered
        + w_buffers * 2 * weight_bytes          # W1, W2 (resident)
        + 2 * 2 * D * 4                         # bias, v weight (tiny)
        + 2 * TB * D * out_itemsize             # output block
        + (0 if use_out_as_acc else TB * D * 4) # f32 accumulator scratch
    )
    vmem_limit = int(min(64 * 1024 * 1024,
                         max(32 * 1024 * 1024, int(vmem_need * 1.5) + (1 << 20))))

    w_spec_kwargs = {}
    if single_buffer_weights:
        w_spec_kwargs = dict(pipeline_mode=pl.Buffered(1))

    cost = pl.CostEstimate(
        flops=2 * B * S * D * (2 * D + 2),
        transcendentals=B * S * D,
        bytes_accessed=(2 * B * S * D * itemsize      # q + v streamed once
                        + 2 * D * D * itemsize        # W1, W2
                        + 2 * D * 4                   # bias, v weight
                        + B * D * out_itemsize),      # output
    )

    kernel = functools.partial(_additive_attn_kernel,
                               s_total=S, ts_size=TS, ragged_s=ragged_s)

    scratch_shapes = [] if use_out_as_acc else [pltpu.VMEM((TB, 1, D), jnp.float32)]

    out = pl.pallas_call(
        kernel,
        out_shape=jax.ShapeDtypeStruct((B, 1, D), out_dtype),
        grid_spec=pltpu.PrefetchScalarGridSpec(
            num_scalar_prefetch=0,
            grid=grid,
            in_specs=[
                pl.BlockSpec((TB, TS, D), lambda b, s: (b, s, 0)),          # query
                pl.BlockSpec((TB, TS, D), lambda b, s: (b, s, 0)),          # values
                pl.BlockSpec((D, D), lambda b, s: (0, 0), **w_spec_kwargs),  # W1
                pl.BlockSpec((D, D), lambda b, s: (0, 0), **w_spec_kwargs),  # W2
                pl.BlockSpec((1, D), lambda b, s: (0, 0)),                   # bias
                pl.BlockSpec((1, D), lambda b, s: (0, 0)),                   # v weight
            ],
            out_specs=pl.BlockSpec((TB, 1, D), lambda b, s: (b, 0, 0)),
            scratch_shapes=scratch_shapes,
        ),
        compiler_params=pltpu.CompilerParams(
            dimension_semantics=("parallel", "arbitrary"),
            vmem_limit_bytes=vmem_limit,
        ),
        cost_estimate=cost,
    )(query, values, w1, w2, bias2, vw2)

    return out


def reference(query, values, w1, w2, bias, v_weight):
    t1 = query @ w1.T + values @ w2.T
    energy = jnp.tanh(t1 + bias)
    alpha = energy @ v_weight.T                                  # (B, S, 1)
    return jnp.matmul(jnp.swapaxes(alpha, 1, 2), values)         # (B, 1, D)


if __name__ == "__main__":
    B, S, D = 2, 8, 32
    key = jax.random.PRNGKey(0)
    kq, kv, k1, k2, kb, kvw = jax.random.split(key, 6)

    query = jax.random.normal(kq, (B, S, D), jnp.float32)
    values = jax.random.normal(kv, (B, S, D), jnp.float32)

    bound = 1.0 / math.sqrt(D)
    w1 = jax.random.uniform(k1, (D, D), jnp.float32, -bound, bound)
    w2 = jax.random.uniform(k2, (D, D), jnp.float32, -bound, bound)
    v_weight = jax.random.uniform(kvw, (1, D), jnp.float32, -bound, bound)
    # The module initializes bias to zeros; use small random values here to
    # actually exercise the bias-broadcast path (forward semantics unchanged).
    bias = 0.1 * jax.random.normal(kb, (1, 1, D), jnp.float32)

    # f32 compute path: must match the f32 reference tightly.
    out_f32 = additive_attention(query, values, w1, w2, bias, v_weight,
                                 compute_dtype=jnp.float32)
    jax.block_until_ready(out_f32)
    ref_f32 = reference(query, values, w1, w2, bias, v_weight)
    assert out_f32.shape == (B, 1, D)
    err_f32 = float(jnp.max(jnp.abs(out_f32 - ref_f32)))
    assert jnp.allclose(out_f32, ref_f32, atol=1e-3, rtol=1e-3), f"f32 max_err={err_f32}"

    # Default bf16-streaming path: compare against a bf16-rounded f32 reference
    # (apples-to-apples; accumulation in both is f32).
    out_bf16 = additive_attention(query, values, w1, w2, bias, v_weight)
    jax.block_until_ready(out_bf16)
    cast = lambda x: x.astype(jnp.bfloat16).astype(jnp.float32)
    ref_bf16 = reference(cast(query), cast(values), cast(w1), cast(w2), bias, v_weight)
    assert out_bf16.shape == (B, 1, D)
    err_bf16 = float(jnp.max(jnp.abs(out_bf16 - ref_bf16)))
    assert jnp.allclose(out_bf16, ref_bf16, atol=5e-3, rtol=5e-3), f"bf16 max_err={err_bf16}"

    print("KERNEL_OK")
</pallas_src>

<mosaic_0001>
module attributes {stable_mosaic.version = 11 : i64} {
  func.func @_additive_attn_kernel(%arg0: i32, %arg1: i32, %arg2: memref<1x8x32xf32, #tpu.memory_space<vmem>>, %arg3: memref<1x8x32xf32, #tpu.memory_space<vmem>>, %arg4: memref<32x32xf32, #tpu.memory_space<vmem>>, %arg5: memref<32x32xf32, #tpu.memory_space<vmem>>, %arg6: memref<1x32xf32, #tpu.memory_space<vmem>>, %arg7: memref<1x32xf32, #tpu.memory_space<vmem>>, %arg8: memref<1x1x32xf32, #tpu.memory_space<vmem>>) attributes {dimension_semantics = [#tpu.dimension_semantics<parallel>, #tpu.dimension_semantics<arbitrary>], iteration_bounds = array<i64: 2, 1>, scalar_prefetch = 0 : i64, scratch_operands = 0 : i64, tpu.core_type = #tpu.core_type<tc>, window_params = [{transform_indices = @transform_0, window_bounds = array<i64: 1, 8, 32>}, {transform_indices = @transform_1, window_bounds = array<i64: 1, 8, 32>}, {pipeline_mode = #tpu.pipeline_mode<synchronous>, transform_indices = @transform_2, window_bounds = array<i64: 32, 32>}, {pipeline_mode = #tpu.pipeline_mode<synchronous>, transform_indices = @transform_3, window_bounds = array<i64: 32, 32>}, {pipeline_mode = #tpu.pipeline_mode<synchronous>, transform_indices = @transform_4, window_bounds = array<i64: 1, 32>}, {pipeline_mode = #tpu.pipeline_mode<synchronous>, transform_indices = @transform_5, window_bounds = array<i64: 1, 32>}, {transform_indices = @transform_6, window_bounds = array<i64: 1, 1, 32>}]} {
    %c0_i32 = arith.constant 0 : i32
    %0 = arith.cmpi eq, %arg1, %c0_i32 : i32
    %1 = arith.extui %0 : i1 to i32
    %c0_i32_0 = arith.constant 0 : i32
    %2 = arith.cmpi ne, %1, %c0_i32_0 : i32
    scf.if %2 {
      %cst_23 = arith.constant 0.000000e+00 : f32
      %29 = vector.broadcast %cst_23 : f32 to vector<1x1x32xf32>
      %c0_24 = arith.constant 0 : index
      %c0_25 = arith.constant 0 : index
      %c0_26 = arith.constant 0 : index
      %30 = vector.load %arg8[%c0_24, %c0_25, %c0_26] : memref<1x1x32xf32, #tpu.memory_space<vmem>>, vector<1x1x32xf32>
      tpu.vector_store %arg8[%c0_24, %c0_25, %c0_26], %29 {strides = array<i32>} : memref<1x1x32xf32, #tpu.memory_space<vmem>>, vector<1x1x32xf32>,
    } else {
    }
    %c0 = arith.constant 0 : index
    %c0_1 = arith.constant 0 : index
    %c0_2 = arith.constant 0 : index
    %3 = vector.load %arg3[%c0, %c0_1, %c0_2] : memref<1x8x32xf32, #tpu.memory_space<vmem>>, vector<1x8x32xf32>
    %c0_3 = arith.constant 0 : index
    %c0_4 = arith.constant 0 : index
    %c0_5 = arith.constant 0 : index
    %4 = vector.load %arg2[%c0_3, %c0_4, %c0_5] : memref<1x8x32xf32, #tpu.memory_space<vmem>>, vector<1x8x32xf32>
    %5 = vector.shape_cast %4 : vector<1x8x32xf32> to vector<8x32xf32>
    %6 = vector.shape_cast %3 : vector<1x8x32xf32> to vector<8x32xf32>
    %c0_6 = arith.constant 0 : index
    %c0_7 = arith.constant 0 : index
    %7 = vector.load %arg4[%c0_6, %c0_7] : memref<32x32xf32, #tpu.memory_space<vmem>>, vector<32x32xf32>
    %cst = arith.constant dense<0.000000e+00> : vector<8x32xf32>
    %8 = tpu.matmul %5, %7, %cst {dimension_numbers = #tpu.dot_dimension_numbers<[1], [1], [0], [0], [0, 0, 1, 0], [], []>} : vector<8x32xf32>, vector<32x32xf32>, vector<8x32xf32> -> vector<8x32xf32>
    %c0_8 = arith.constant 0 : index
    %c0_9 = arith.constant 0 : index
    %9 = vector.load %arg5[%c0_8, %c0_9] : memref<32x32xf32, #tpu.memory_space<vmem>>, vector<32x32xf32>
    %cst_10 = arith.constant dense<0.000000e+00> : vector<8x32xf32>
    %10 = tpu.matmul %6, %9, %cst_10 {dimension_numbers = #tpu.dot_dimension_numbers<[1], [1], [0], [0], [0, 0, 1, 0], [], []>} : vector<8x32xf32>, vector<32x32xf32>, vector<8x32xf32> -> vector<8x32xf32>
    %11 = arith.addf %8, %10 : vector<8x32xf32>
    %c0_11 = arith.constant 0 : index
    %c0_12 = arith.constant 0 : index
    %12 = vector.load %arg6[%c0_11, %c0_12] : memref<1x32xf32, #tpu.memory_space<vmem>>, vector<1x32xf32>
    %13 = vector.broadcast %12 : vector<1x32xf32> to vector<8x32xf32>
    %14 = arith.addf %11, %13 : vector<8x32xf32>
    %15 = math.tanh %14 : vector<8x32xf32>
    %c0_13 = arith.constant 0 : index
    %c0_14 = arith.constant 0 : index
    %16 = vector.load %arg7[%c0_13, %c0_14] : memref<1x32xf32, #tpu.memory_space<vmem>>, vector<1x32xf32>
    %17 = vector.broadcast %16 : vector<1x32xf32> to vector<8x32xf32>
    %18 = arith.mulf %15, %17 : vector<8x32xf32>
    %cst_15 = arith.constant dense<0.000000e+00> : vector<8xf32>
    %19 = vector.multi_reduction <add>, %18, %cst_15 [1] : vector<8x32xf32> to vector<8xf32>
    %20 = vector.shape_cast %19 : vector<8xf32> to vector<8x1xf32>
    %21 = vector.shape_cast %20 : vector<8x1xf32> to vector<1x8x1xf32>
    %c0_16 = arith.constant 0 : index
    %c0_17 = arith.constant 0 : index
    %c0_18 = arith.constant 0 : index
    %22 = vector.load %arg8[%c0_16, %c0_17, %c0_18] : memref<1x1x32xf32, #tpu.memory_space<vmem>>, vector<1x1x32xf32>
    %23 = vector.broadcast %21 : vector<1x8x1xf32> to vector<1x8x32xf32>
    %24 = arith.mulf %23, %3 : vector<1x8x32xf32>
    %cst_19 = arith.constant dense<0.000000e+00> : vector<1x32xf32>
    %25 = vector.multi_reduction <add>, %24, %cst_19 [1] : vector<1x8x32xf32> to vector<1x32xf32>
    %26 = vector.shape_cast %25 : vector<1x32xf32> to vector<1x1x32xf32>
    %27 = arith.addf %22, %26 : vector<1x1x32xf32>
    %c0_20 = arith.constant 0 : index
    %c0_21 = arith.constant 0 : index
    %c0_22 = arith.constant 0 : index
    %28 = vector.load %arg8[%c0_20, %c0_21, %c0_22] : memref<1x1x32xf32, #tpu.memory_space<vmem>>, vector<1x1x32xf32>
    tpu.vector_store %arg8[%c0_20, %c0_21, %c0_22], %27 {strides = array<i32>} : memref<1x1x32xf32, #tpu.memory_space<vmem>>, vector<1x1x32xf32>,
    return
  }
  func.func @transform_0(%arg0: i32, %arg1: i32) -> (i32, i32, i32) {
    %c0_i32 = arith.constant 0 : i32
    %c0_i32_0 = arith.constant 0 : i32
    return %arg0, %arg1, %c0_i32 : i32, i32, i32
  }
  func.func @transform_1(%arg0: i32, %arg1: i32) -> (i32, i32, i32) {
    %c0_i32 = arith.constant 0 : i32
    %c0_i32_0 = arith.constant 0 : i32
    return %arg0, %arg1, %c0_i32 : i32, i32, i32
  }
  func.func @transform_2(%arg0: i32, %arg1: i32) -> (i32, i32) {
    %c0_i32 = arith.constant 0 : i32
    %c0_i32_0 = arith.constant 0 : i32
    %c0_i32_1 = arith.constant 0 : i32
    return %c0_i32, %c0_i32_0 : i32, i32
  }
  func.func @transform_3(%arg0: i32, %arg1: i32) -> (i32, i32) {
    %c0_i32 = arith.constant 0 : i32
    %c0_i32_0 = arith.constant 0 : i32
    %c0_i32_1 = arith.constant 0 : i32
    return %c0_i32, %c0_i32_0 : i32, i32
  }
  func.func @transform_4(%arg0: i32, %arg1: i32) -> (i32, i32) {
    %c0_i32 = arith.constant 0 : i32
    %c0_i32_0 = arith.constant 0 : i32
    %c0_i32_1 = arith.constant 0 : i32
    return %c0_i32, %c0_i32_0 : i32, i32
  }
  func.func @transform_5(%arg0: i32, %arg1: i32) -> (i32, i32) {
    %c0_i32 = arith.constant 0 : i32
    %c0_i32_0 = arith.constant 0 : i32
    %c0_i32_1 = arith.constant 0 : i32
    return %c0_i32, %c0_i32_0 : i32, i32
  }
  func.func @transform_6(%arg0: i32, %arg1: i32) -> (i32, i32, i32) {
    %c0_i32 = arith.constant 0 : i32
    %c0_i32_0 = arith.constant 0 : i32
    %c0_i32_1 = arith.constant 0 : i32
    return %arg0, %c0_i32, %c0_i32_0 : i32, i32, i32
  }
}

</mosaic_0001>

<bundles_post_ra>
// kernel: tpu_custom_call.1
= control target key start
LH: loop header
LB: loop body
LE: loop exit
PB: predicated region body
PF: predicated region fallthrough
CT: control target
= control target key end

     0   :  { %s1453_s0 = inlined_call_operand.hbm [shape: f32[2,8,32], index: 0, kind: input, shape index: {}]   ;;  %s1454_s1 = inlined_call_operand.hbm [shape: f32[2,8,32], index: 1, kind: input, shape index: {}]   ;;  %s1455_s2 = inlined_call_operand.hbm [shape: f32[32,32], index: 2, kind: input, shape index: {}]   ;;  %s1456_s3 = inlined_call_operand.hbm [shape: f32[32,32], index: 3, kind: input, shape index: {}]   ;;  %s1457_s4 = inlined_call_operand.vmem [shape: f32[1,32], index: 4, kind: input, shape index: {}]   ;;  %s1458_s5 = inlined_call_operand.vmem [shape: f32[1,32], index: 5, kind: input, shape index: {}]   ;;  %s1459_s6 = inlined_call_operand.hbm [shape: f32[2,1,32], index: 6, kind: output, shape index: {}]  }
   0x1   :  { %1466 = sst [smem:[#allocation19_spill]] %s1455_s2 }
   0x2   :  { %1467 = sst [smem:[#allocation20_spill]] %s1456_s3 }
   0x3   :  { %11 = vsyncpa [#allocation3], 0 }
   0x4   :  { %13 = vsyncpa [#allocation3 + $0x1], 0 }
   0x5   :  { %14 = vsyncpa [#allocation6], 0 }
   0x6   :  { %16 = vsyncpa [#allocation6 + $0x1], 0 }
   0x7   :  { %17 = vsyncpa [#allocation9], 0 }
   0x8   :  { %18 = vsyncpa [#allocation4], 0 }
   0x9   :  { %20 = vsyncpa [#allocation4 + $0x1], 0  ;;  %s1130_s21 = smov 0   ;;  %s1132_s22 = smov 0  }
   0xa   :  { %s1134_s23 = smov 0   ;;  %s1136_s24 = smov 0  }
   0xb   :  { %s1138_s25 = smov 0   ;;  %s1140_s26 = smov 0  }
   0xc LB: > { %1468 = sst [smem:[#allocation16_spill]] %s1079_s25  ;;  %s1161_s27 = sadd.s32 4294967295, %s1083_s26   ;;  %s1083_s26 = sphi %s1140_s26, %s26_s26   ;;  %s1079_s25 = sphi %s1138_s25, %s1493_s25   ;;  %s1075_s24 = sphi %s1136_s24, %s1492_s24   ;;  %s1071_s23 = sphi %s1134_s23, %s1496_s23   ;;  %s1067_s22 = sphi %s1132_s22, %s1495_s22   ;;  %s1063_s21 = sphi %s1130_s21, %s1494_s21  }
   0xd   : > { %s701_s28 = sadd.s32 4294967294, %s1083_s26   ;;  %p60_p0 = scmp.ne.s32.totalorder %s1067_s22, %s1063_s21 }
   0xe   : > { %p1460_p1 = scmp.eq.s32.totalorder %s1161_s27, 0  ;;  %p202_p3 = scmp.eq.s32.totalorder %s701_s28, 1 }
   0xf   : > { %p702_p5 = scmp.ge.s32.totalorder %s1083_s26, 1  ;;  %p209_p7 = scmp.lt.s32.totalorder %s1083_s26, 3 }
  0x10   : > { %p1170_p4 = por %p1460_p1, %p60_p0  ;;  %p1175_p6 = por %p202_p3, %p60_p0 }
  0x11   : > { %p1180_p8 = pnand %p702_p5, %p209_p7  ;;  %s1085_s8 = smov [#allocation7]  }
  0x12   : > { %s1469_s29 = scalar_select %p1170_p4, 1, 0 }
  0x13   : > { %s1470_s30 = scalar_select %p1175_p6, 1, 0 }
  0x14   : > { %s1471_s7 = scalar_select %p1180_p8, 1, 0 }
  0x15   : > { %s221_s9 = sshll.u32 %s1085_s8, 4  ;;  %p792_p9 = pneg %p1180_p8  ;;  %s1184_s9 = int_to_ptr.vmem [resolvable:$true] %s221_s9 }
  0x16   : > { %s1086_s11 = smov [#allocation8]   ;;  %s1473_s2 = sld [smem:[#allocation19_spill]] }
  0x17   : > { %p1191_p11 = pnand %p792_p9, %p1460_p1  ;;  %s234_s12 = sshll.u32 %s1086_s11, 4  ;;  %s1195_s12 = int_to_ptr.vmem [resolvable:$true] %s234_s12 }
  0x19   : > { %p875_p13 = pneg %p1191_p11 }
  0x1c   : > { %s873_s15 = scalar_lea.hbm %s1473_s2, 512 }
  0x1d   : > { %p874_p12 = scmp.ne.s32.totalorder %s1473_s2, %s873_s15  ;;  %p880_p5 = scmp.lt.u32.totalorder %s873_s15, %s1473_s2 }
  0x1f   : > { %p876_p0 = pnand %p875_p13, %p874_p12 }
  0x21   : > { %p877_p3 = pneg %p876_p0 }
  0x23   : > { %p882_p7 = pnand %p880_p5, %p877_p3 }
  0x25   : > { %885 = shalt.err (!%p882_p7)
}
  0x26   : > { %s886_s20 = scalar_lea.vmem %s1184_s9, 512  ;;  %p894_p2 = scmp.lt.s32.totalorder %s1184_s9, %s1184_s9 }
  0x27   : > { %p887_p9 = scmp.ne.s32.totalorder %s1184_s9, %s886_s20  ;;  %p895_p12 = scmp.lt.s32.totalorder %s886_s20, %s886_s20 }
  0x29   : > { %p889_p10 = pnand %p887_p9, %p875_p13  ;;  %p896_p0 = por %p895_p12, %p894_p2 }
  0x2b   : > { %p890_p1 = pneg %p889_p10 }
  0x2d   : > { %p897_p6 = pnand %p896_p0, %p890_p1 }
  0x2f   : > { %900 = shalt.err (!%p897_p6)
}
  0x30   : > { %s1087_s28 = smov 128   ;;  %s1088_s8 = smov 8  }
  0x31   : > { %795 = dma.hbm_to_vmem [thread:$0]  (!%p1191_p11), %s1473_s2, 512, %s1184_s9, [#allocation6], %s1087_s28, %s1087_s28, %s1088_s8  }
  0x32   : > { %s1474_s3 = sld [smem:[#allocation20_spill]] }
  0x38   : > { %s901_s16 = scalar_lea.hbm %s1474_s3, 512 }
  0x39   : > { %p902_p2 = scmp.ne.s32.totalorder %s1474_s3, %s901_s16  ;;  %p908_p10 = scmp.lt.u32.totalorder %s901_s16, %s1474_s3 }
  0x3b   : > { %p904_p1 = pnand %p902_p2, %p875_p13 }
  0x3d   : > { %p905_p6 = pneg %p904_p1 }
  0x3f   : > { %p910_p3 = pnand %p908_p10, %p905_p6 }
  0x41   : > { %913 = shalt.err (!%p910_p3)
}
  0x42   : > { %s914_s9 = scalar_lea.vmem %s1195_s12, 512  ;;  %p922_p12 = scmp.lt.s32.totalorder %s1195_s12, %s1195_s12 }
  0x43   : > { %p915_p5 = scmp.ne.s32.totalorder %s1195_s12, %s914_s9  ;;  %p923_p0 = scmp.lt.s32.totalorder %s914_s9, %s914_s9 }
  0x45   : > { %p917_p7 = pnand %p915_p5, %p875_p13  ;;  %p924_p2 = por %p923_p0, %p922_p12 }
  0x47   : > { %p918_p9 = pneg %p917_p7 }
  0x49   : > { %p925_p1 = pnand %p924_p2, %p918_p9 }
  0x4b   : > { %928 = shalt.err (!%p925_p1)
}
  0x4c   : > { %798 = dma.hbm_to_vmem [thread:$0]  (!%p1191_p11), %s1474_s3, 512, %s1195_s12, [#allocation9], %s1087_s28, %s1087_s28, %s1088_s8  }
  0x4d   : > { %s38_s14 = sadd.s32 1, %s1079_s25  ;;  %s47_s15 = sadd.s32 1, %s1071_s23 }
  0x4e   : > { %p40_p13 = scmp.ge.s32.totalorder %s38_s14, 2  ;;  %p54_p6 = scmp.ne.s32.totalorder %s1071_s23, %s1067_s22 }
  0x4f   : > { %p55_p10 = scmp.eq.s32.totalorder %s1083_s26, 0  ;;  %p812_p3 = scmp.lt.s32.totalorder %s1083_s26, 2 }
  0x50   : > { %s1498_s14 = smov (%p40_p13, %s38_s14), 0  ;;  %p1476_p7 = scmp.eq.s32.totalorder %s1161_s27, 1 }
  0x51   : > { %1475 = sst [smem:[#allocation17_spill]] %s1498_s14  ;;  %p56_p5 = por %p55_p10, %p54_p6 }
  0x52   : > { %p1259_p9 = por %p1476_p7, %p54_p6  ;;  %s42_s16 = ssub.s32 %s1079_s25, %s1498_s14 }
  0x53   : > { %s254_s17 = sand.u32 1, %s1071_s23   ;;  %p45_p12 = scmp.eq.s32.totalorder %s42_s16, 0 }
  0x54   : > { %s1477_s10 = scalar_select %p1259_p9, 1, 0 }
  0x55   : > { %s1266_s12 = sshll.u32 %s254_s17, 3  ;;  %s707_s28 = sshll.u32 %s1079_s25, 7 }
  0x56   : > { %s1270_s8 = scalar_select %p45_p12, %s1071_s23, %s47_s15  }
  0x57   : > { %s1275_s20 = scalar_lea.hbm %s1453_s0, %s707_s28  ;;  %s258_s9 = scalar_lea.vmem [#allocation2], %s1266_s12 }
  0x58   : > { %1478 = sst [smem:[#allocation18_spill]] %s1270_s8  ;;  %s266_s11 = sshll.u32 %s258_s9, 4  ;;  %s1284_s11 = int_to_ptr.vmem [resolvable:$true] %s266_s11 }
  0x59   : > { %p1280_p11 = pnand %p812_p3, %p56_p5  ;;  %s1289_s18 = scalar_lea.hbm %s1454_s1, %s707_s28 }
  0x5a   : > { %s255_s19 = scalar_lea.sflag [#allocation3], %s254_s17  ;;  %s929_s2 = scalar_lea.hbm %s1275_s20, 128 }
  0x5b   : > { %p930_p0 = scmp.ne.s32.totalorder %s1275_s20, %s929_s2  ;;  %p931_p2 = pneg %p1280_p11 }
  0x5c   : > { %s934_s14 = scalar_lea.hbm %s1453_s0, 256  ;;  %p935_p6 = scmp.lt.u32.totalorder %s1275_s20, %s1453_s0 }
  0x5d   : > { %p932_p1 = pnand %p931_p2, %p930_p0  ;;  %p936_p10 = scmp.lt.u32.totalorder %s934_s14, %s929_s2 }
  0x5e   : > { %p938_p5 = scmp.lt.u32.totalorder %s929_s2, %s1275_s20 }
  0x5f   : > { %p933_p13 = pneg %p932_p1  ;;  %p937_p3 = por %p936_p10, %p935_p6 }
  0x61   : > { %p939_p7 = por %p938_p5, %p937_p3 }
  0x63   : > { %p940_p12 = pnand %p939_p7, %p933_p13 }
  0x65   : > { %943 = shalt.err (!%p940_p12)
}
  0x66   : > { %s944_s17 = scalar_lea.vmem %s1284_s11, 128  ;;  %s1089_s3 = smov [#allocation2]  }
  0x67   : > { %p945_p0 = scmp.ne.s32.totalorder %s1284_s11, %s944_s17  ;;  %s949_s28 = sshll.u32 %s1089_s3, 4  ;;  %s950_s28 = int_to_ptr.vmem [resolvable:$false] %s949_s28 }
  0x68   : > { %s951_s25 = scalar_lea.vmem %s950_s28, 256  ;;  %p952_p4 = scmp.lt.s32.totalorder %s1284_s11, %s950_s28 }
  0x69   : > { %p947_p1 = pnand %p945_p0, %p931_p2  ;;  %p953_p6 = scmp.lt.s32.totalorder %s951_s25, %s944_s17 }
  0x6b   : > { %p948_p9 = pneg %p947_p1  ;;  %p954_p10 = por %p953_p6, %p952_p4 }
  0x6d   : > { %p955_p3 = pnand %p954_p10, %p948_p9 }
  0x6f   : > { %958 = shalt.err (!%p955_p3)
}
  0x70   : > { %802 = dma.hbm_to_vmem [thread:$0]  (!%p1280_p11), %s1275_s20, 128, %s1284_s11, %s255_s19  }
  0x71   : > { %s273_s2 = sand.u32 1, %s1083_s26   ;;  %s277_s14 = scalar_lea.vmem [#allocation5], %s1266_s12 }
  0x72   : > { %s285_s8 = sshll.u32 %s277_s14, 4  ;;  %s274_s15 = scalar_lea.sflag [#allocation6], %s273_s2  ;;  %s286_s8 = int_to_ptr.vmem [resolvable:$true] %s285_s8 }
  0x73   : > { %s959_s16 = scalar_lea.hbm %s1289_s18, 128  ;;  %s964_s3 = scalar_lea.hbm %s1454_s1, 256 }
  0x74   : > { %p960_p4 = scmp.ne.s32.totalorder %s1289_s18, %s959_s16  ;;  %p965_p5 = scmp.lt.u32.totalorder %s1289_s18, %s1454_s1 }
  0x75   : > { %p966_p7 = scmp.lt.u32.totalorder %s964_s3, %s959_s16  ;;  %p968_p0 = scmp.lt.u32.totalorder %s959_s16, %s1289_s18 }
  0x76   : > { %p962_p9 = pnand %p960_p4, %p931_p2 }
  0x77   : > { %p967_p12 = por %p966_p7, %p965_p5 }
  0x78   : > { %p963_p13 = pneg %p962_p9 }
  0x79   : > { %p969_p1 = por %p968_p0, %p967_p12 }
  0x7b   : > { %p970_p6 = pnand %p969_p1, %p963_p13 }
  0x7d   : > { %973 = shalt.err (!%p970_p6)
}
  0x7e   : > { %s974_s12 = scalar_lea.vmem %s286_s8, 128  ;;  %s1090_s20 = smov [#allocation5]  }
  0x7f   : > { %p975_p10 = scmp.ne.s32.totalorder %s286_s8, %s974_s12  ;;  %s979_s11 = sshll.u32 %s1090_s20, 4  ;;  %s980_s11 = int_to_ptr.vmem [resolvable:$false] %s979_s11 }
  0x80   : > { %s981_s19 = scalar_lea.vmem %s980_s11, 256  ;;  %p982_p9 = scmp.lt.s32.totalorder %s286_s8, %s980_s11 }
  0x81   : > { %p977_p3 = pnand %p975_p10, %p931_p2  ;;  %p983_p8 = scmp.lt.s32.totalorder %s981_s19, %s974_s12 }
  0x83   : > { %p978_p4 = pneg %p977_p3  ;;  %p984_p5 = por %p983_p8, %p982_p9 }
  0x85   : > { %p985_p7 = pnand %p984_p5, %p978_p4 }
  0x87   : > { %988 = shalt.err (!%p985_p7)
}
  0x88   : > { %805 = dma.hbm_to_vmem [thread:$0]  (!%p1280_p11), %s1289_s18, 128, %s286_s8, %s274_s15  }
  0x89   : > { %p1480_p13 = scmp.ne.s32.totalorder %s1471_s7, 0 }
  0x8a   : > { %s1340_s2 = sand.u32 (!%p1480_p13), 1, %s1067_s22   ;;  %p1481_p8 = scmp.ne.s32.totalorder (!%p1480_p13), %s1469_s29, 0 }
  0x8b   : > { %294 = sbr.rel (%p1480_p13) target bundleno = 580 (0x244), region = 44  ;;  %s711_s14 = sshll.u32 (!%p1480_p13), %s1340_s2, 3 }
  0x8c   : > { %s297_s16 = scalar_lea.sflag (!%p1480_p13), [#allocation3], %s1340_s2  ;;  %s1344_s9 = scalar_lea.vmem (!%p1480_p13), [#allocation2], %s711_s14 }
  0x92   : > { %1042 = dma.done.wait (%p1481_p8), %s297_s16, 128  }
  0x93   : > { %1044 = vsyncadd (%p1481_p8), %s297_s16, 4294967168  ;;  %s305_s13 = sand.u32 1, %s1161_s27   ;;  %s1351_s18 = scalar_lea.vmem [#allocation5], %s711_s14 }
  0x94   : > { %s306_s7 = scalar_lea.sflag [#allocation6], %s305_s13 }
  0x95   : > { %1046 = dma.done.wait (%p1481_p8), %s306_s7, 128  }
  0x96   : > { %1048 = vsyncadd (%p1481_p8), %s306_s7, 4294967168  ;;  %p1482_p11 = scmp.eq.s32.totalorder %s1161_s27, 0 }
  0x98   : > { %1050 = dma.done.wait (%p1482_p11), [#allocation6], 512   ;;  %p1483_p2 = pmov %p1482_p11 }
  0x9a   : > { %1052 = vsyncadd (%p1483_p2), [#allocation6], 4294966784  ;;  %p1484_p12 = pmov %p1483_p2 }
  0x9b   : > { %p1485_p0 = pmov %p1483_p2 }
  0x9c   : > { %1054 = dma.done.wait (%p1484_p12), [#allocation9], 512  }
  0x9d   : > { %1056 = vsyncadd (%p1485_p0), [#allocation9], 4294966784  ;;  %vm354_vm0 = vcmask 253952   ;;  %v1091_v0 = vmov 0.0|0.0   ;;  %s1366_s8 = scalar_lea.vmem [#allocation10], %s1340_s2  ;;  %v1092_v1 = vmov 0.0  }
  0x9e   : > { %762 = vmatprep.subr.bf16.mxu0 %v1091_v0  ;;  %770 = vmatprep.subr.bf16.mxu1 %v1091_v0  ;;  %355 = vst.msk [vmem:[%s1366_s8] sm:$0x1] %vm354_vm0, %v1092_v1  ;;  %vm1093_vm1 = vmmov 0   ;;  %vm366_vm2 = vcmask 261120   ;;  %v362_v3 = vld [vmem:[#allocation8] sm:$0xff]  ;;  %v363_v4 = vld [vmem:[#allocation8 + $0x8] sm:$0xff] }
  0x9f   : > { %748 = vmatprep.mubr.msk.f32.mxu0 %vm1093_vm1, %v1092_v1  ;;  %759 = vmatprep.mubr.msk.f32.mxu1 %vm1093_vm1, %v1092_v1  ;;  %vm1372_vm3 = vmpackc.low %vm366_vm2, %vm366_vm2  ;;  %v358_v5 = vld [vmem:[#allocation7] sm:$0xff]  ;;  %v763_v6 = vpack.c.bf16 %v363_v4, %v362_v3  ;;  %v359_v7 = vld [vmem:[#allocation7 + $0x8] sm:$0xff]  ;;  %s727_s3 = sshll.u32 %s1075_s24, 4  ;;  %s582_s28 = sshll.u32 %s1366_s8, 4  ;;  %s1404_s28 = int_to_ptr.vmem [resolvable:$true] %s582_s28 }
  0xa0   : > { %v771_v8 = vpack.c.bf16 %v359_v7, %v358_v5  ;;  %v364_v9 = vld [vmem:[#allocation8 + $0x10] sm:$0xff]  ;;  %v365_v10 = vld [vmem:[#allocation8 + $0x18] sm:$0xff]  ;;  %v357_v16 = vld [vmem:[%s1344_s9] sm:$0xff]  ;;  %s1402_s20 = scalar_lea.hbm %s1459_s6, %s727_s3  ;;  %s570_s11 = scalar_lea.sflag [#allocation4], %s1340_s2 }
  0xa1   : > { %765 = vmatpush3.bf16.xpose.msk.msra.mxu0 %vm1372_vm3, %v763_v6  ;;  %v360_v11 = vld [vmem:[#allocation7 + $0x10] sm:$0xff]  ;;  %v361_v12 = vld [vmem:[#allocation7 + $0x18] sm:$0xff]  ;;  %v767_v13 = vpack.c.bf16 %v365_v10, %v364_v9  ;;  %v725_v19 = vld [vmem:[%s1457_s4] ss:$0 sm:$0xff]  ;;  %s989_s19 = scalar_lea.vmem %s1404_s28, 16  ;;  %p1488_p6 = scmp.ne.s32.totalorder %s1477_s10, 0 }
  0xa2   : > { %773 = vmatpush3.bf16.xpose.msk.msra.mxu1 %vm1372_vm3, %v771_v8  ;;  %766 = vmatprep.subr.bf16.mxu0 %v1091_v0  ;;  %v775_v14 = vpack.c.bf16 %v361_v12, %v360_v11  ;;  %v356_v15 = vld [vmem:[%s1351_s18] sm:$0xff]  ;;  %v726_v24 = vld [vmem:[%s1458_s5] ss:$0 sm:$0xff]  ;;  %p990_p1 = scmp.ne.s32.totalorder %s1404_s28, %s989_s19  ;;  %s1094_s24 = smov [#allocation10]  }
  0xa3   : > { %774 = vmatprep.subr.bf16.mxu1 %v1091_v0  ;;  %s993_s14 = sshll.u32 %s1094_s24, 4  ;;  %s994_s14 = int_to_ptr.vmem [resolvable:$false] %s993_s14 }
  0xa4   : > { %p991_p10 = pnand %p990_p1, %p1488_p6  ;;  %s995_s16 = scalar_lea.vmem %s994_s14, 32 }
  0xa5   : > { %v557_v36 = vld [vmem:[%s1366_s8] sm:$0x1]  ;;  %p996_p4 = scmp.lt.s32.totalorder %s1404_s28, %s994_s14  ;;  %p997_p9 = scmp.lt.s32.totalorder %s995_s16, %s989_s19 }
  0xa6   : > { %p992_p3 = pneg %p991_p10 }
  0xa7   : > { %p998_p5 = por %p997_p9, %p996_p4 }
  0xa9   : > { %769 = vmatpush3.bf16.xpose.msk.msra.mxu0 %vm1372_vm3, %v767_v13  ;;  %p999_p7 = pnand %p998_p5, %p992_p3 }
  0xaa   : > { %777 = vmatpush3.bf16.xpose.msk.msra.mxu1 %vm1372_vm3, %v775_v14 }
  0xb0   : > { %749 = vmatmul.mubr.msk.f32.vlgmr.msra.gmra.mrb[0].mxu0 %vm366_vm2, %v356_v15 }
  0xb1   : > { %760 = vmatmul.mubr.msk.f32.vlgmr.msra.gmra.mrb[0].mxu1 %vm366_vm2, %v357_v16 }
 0x183   : > { %v448_v17 = vpop.f32.mrb[0].mxu0 }
 0x184   : > { %v533_v18 = vpop.f32.mrb[0].mxu1  ;;  %v750_v20 = vpop.f32.mrb[1].mxu0 }
 0x185   : > { %v534_v21 = vadd.f32 %v533_v18, %v448_v17  ;;  %v761_v22 = vpop.f32.mrb[1].mxu1 }
 0x187   : > { %v544_v23 = vadd.f32 %v725_v19, %v534_v21 }
 0x189   : > { %871 = vtanh.f32 %v544_v23 }
 0x193   : > { %v872_v25 = vpop.eup %871 }
 0x194   : > { %v553_v26 = vmul.f32 %v872_v25, %v726_v24 }
 0x196   : > { %v554_v27 = vsel %vm366_vm2, %v553_v26, 0.0 }
 0x197   : > { %555 = vadd.xlane.f32.xlu0 %v554_v27 }
 0x224   : > { %v556_v28 = vpop.xlane.xlu0 %555 }
 0x225   : > { %v558_v29 = vmul.f32 %v556_v28, %v356_v15 }
 0x227   : > { %v559_v30 = vsel %vm366_vm2, %v558_v29, 0.0 }
 0x228   : > { %v560_v31 = vrot.slane %v559_v30, 4 }
 0x22a   : > { %v561_v32 = vadd.f32 %v560_v31, %v559_v30 }
 0x22c   : > { %v562_v33 = vrot.slane %v561_v32, 2 }
 0x22e   : > { %v563_v34 = vadd.f32 %v562_v33, %v561_v32 }
 0x230   : > { %v564_v35 = vrot.slane %v563_v34, 1 }
 0x232   : > { %v565_v37 = vadd.f32 %v564_v35, %v563_v34 }
 0x234   : > { %v566_v38 = vadd.f32 %v565_v37, %v557_v36 }
 0x236   : > { %568 = vst.msk [vmem:[%s1366_s8] sm:$0x1] %vm354_vm0, %v566_v38 }
 0x237   : > { %1002 = shalt.err (!%p999_p7)
}
 0x238   : > { %s1003_s2 = scalar_lea.hbm %s1402_s20, 16  ;;  %s1007_s7 = scalar_lea.hbm %s1459_s6, 32 }
 0x239   : > { %p1004_p13 = scmp.ne.s32.totalorder %s1402_s20, %s1003_s2  ;;  %p1008_p2 = scmp.lt.u32.totalorder %s1402_s20, %s1459_s6 }
 0x23a   : > { %p1009_p12 = scmp.lt.u32.totalorder %s1007_s7, %s1003_s2  ;;  %p1011_p1 = scmp.lt.u32.totalorder %s1003_s2, %s1402_s20 }
 0x23b   : > { %p1005_p8 = pnand %p1004_p13, %p1488_p6 }
 0x23c   : > { %p1010_p0 = por %p1009_p12, %p1008_p2 }
 0x23d   : > { %p1006_p11 = pneg %p1005_p8 }
 0x23e   : > { %p1012_p10 = por %p1011_p1, %p1010_p0 }
 0x240   : > { %p1013_p3 = pnand %p1012_p10, %p1006_p11 }
 0x242   : > { %1016 = shalt.err (!%p1013_p3)
}
 0x243   : > { %790 = dma.vmem_to_hbm [thread:$0]  (%p1488_p6), %s1404_s28, 16, %s1402_s20, %s570_s11  }
 0x244 PF: > { %s594_s27 = sand.u32 1, %s1063_s21   ;;  %p1489_p4 = scmp.ne.s32.totalorder %s1470_s30, 0 }
 0x245   : > { %p1490_p9 = scmp.ge.s32.totalorder %s1083_s26, 2  ;;  %s595_s29 = scalar_lea.sflag [#allocation4], %s594_s27 }
 0x247   : > { %p807_p5 = pnand %p1490_p9, %p1489_p4 }
 0x249   : > { %1058 = dma.done.wait (!%p807_p5), %s595_s29, 16  }
 0x24a   : > { %1060 = vsyncadd (!%p807_p5), %s595_s29, 4294967280  ;;  %s26_s26 = sadd.s32 1, %s1083_s26   ;;  %s1491_s10 = sld [smem:[#allocation18_spill]] }
 0x24b   : > { %p23_p7 = scmp.ge.s32.totalorder %s26_s26, 4   ;;  %s1492_s24 = sld [smem:[#allocation16_spill]] }
 0x24c   : > { %s1493_s25 = sld [smem:[#allocation17_spill]]  ;;  %s1494_s21 = smov %s1067_s22 }
 0x24d   : > { %s1495_s22 = smov %s1071_s23  ;;  %25 = sbr.rel (!%p23_p7) target bundleno = 12 (0xc), region = 114 }
 0x250   : > { %s1496_s23 = smov %s1491_s10 }
 0x254   :  { %599 = vsyncpa [#allocation3], 1 }
 0x255   :  { %601 = vsyncpa [#allocation3 + $0x1], 1 }
 0x256   :  { %602 = vsyncpa [#allocation6], 1 }
 0x257   :  { %604 = vsyncpa [#allocation6 + $0x1], 1 }
 0x258   :  { %605 = vsyncpa [#allocation9], 1 }
 0x259   :  { %606 = vsyncpa [#allocation4], 1 }
 0x25a   :  { %608 = vsyncpa [#allocation4 + $0x1], 1 }

</bundles_post_ra>
